<compile_context>
chip_gen: v6e
topology: v6e:2x2x1
jax: 0.10.0
libtpu: 0.0.40
codegen_flags: <defaults>
</compile_context>

<pallas_src>
import math
import functools

import jax
import jax.numpy as jnp
from jax.experimental import pallas as pl
from jax.experimental.pallas import tpu as pltpu

BN_EPS = 1e-5


def _bn_train_fused(h, gamma, beta, inv_b):
    """Training-mode BatchNorm1d (batch stats, biased variance) as a single
    stats pass folded into one scale/shift on the (B, D) tile. f32 throughout.

    sum(h) and sum(h*h) are independent reductions (issue back-to-back on the
    XLU); variance is clamped at 0 to guard against cancellation."""
    s1 = jnp.sum(h, axis=0, keepdims=True)            # (1, D)
    s2 = jnp.sum(h * h, axis=0, keepdims=True)        # (1, D)
    mean = s1 * inv_b
    var = jnp.maximum(s2 * inv_b - mean * mean, 0.0)   # biased variance, >= 0
    scale = gamma * jax.lax.rsqrt(var + BN_EPS)        # rsqrt -> EUP slot
    shift = beta - mean * scale
    return h * scale + shift                           # 2 full-width VPU ops


def make_resnet_kernel(n_blocks, d_main, d_hidden, d_out, compute_dtype):
    cdt = compute_dtype

    def kernel(x_ref, fw_ref, w1_ref, w2_ref, hw_ref, vec_ref, out_ref):
        # vec slab layout (rows, all f32, lane-padded to d_max):
        #   rows 3k .. 3k+2        : block k gamma, beta, b1 (d_hidden)
        #   rows 3*n_blocks + 0..2 : head gamma, head beta, head bias (d_out)
        # (first-layer bias and block second-linear biases are dropped: they
        #  are per-feature constants canceled by the downstream batch-mean
        #  subtraction of train-mode BatchNorm.)
        batch = x_ref.shape[0]
        inv_b = 1.0 / float(batch)

        # First layer: Linear(d_in, d_main). x cast to bf16 in-kernel, f32
        # MXU accumulation. Bias omitted (canceled by block 0's BatchNorm).
        h = jnp.dot(x_ref[...].astype(cdt), fw_ref[...],
                    preferred_element_type=jnp.float32)

        # ResNet blocks (dropout p=0.0 -> identity). n_blocks is small: unrolled.
        for k in range(n_blocks):
            base = 3 * k
            gamma = vec_ref[base + 0:base + 1, :d_main]    # (1, d_main) f32
            beta = vec_ref[base + 1:base + 2, :d_main]
            b1 = vec_ref[base + 2:base + 3, :d_hidden]

            z = _bn_train_fused(h, gamma, beta, inv_b)
            z = jnp.dot(z.astype(cdt), w1_ref[k],
                        preferred_element_type=jnp.float32) + b1
            z = jnp.maximum(z, 0.0)                        # ReLU (f32)
            z = jnp.dot(z.astype(cdt), w2_ref[k],
                        preferred_element_type=jnp.float32)
            h = h + z                                      # skip connection (f32)

        hbase = 3 * n_blocks
        hg = vec_ref[hbase + 0:hbase + 1, :d_main]
        hb = vec_ref[hbase + 1:hbase + 2, :d_main]
        hbias = vec_ref[hbase + 2:hbase + 3, :d_out]

        # Head: BatchNorm -> ReLU -> Linear(d_main, d_out)
        z = _bn_train_fused(h, hg, hb, inv_b)
        z = jnp.maximum(z, 0.0)
        out_ref[...] = (
            jnp.dot(z.astype(cdt), hw_ref[...],
                    preferred_element_type=jnp.float32) + hbias
        ).astype(out_ref.dtype)

    return kernel


def pack_params(fw, fb, blocks, head_gamma, head_beta, hw, hb,
                compute_dtype=jnp.bfloat16):
    """Pack all parameters into 5 arrays so the kernel has only 6 operands.

    blocks: list of (gamma, beta, w1, b1, w2, b2) per block.
    fb and each block's b2 are intentionally NOT packed: they are canceled by
    the downstream train-mode BatchNorm (mean subtraction), so the kernel
    never needs them.
    Returns (fw, w1_stack, w2_stack, hw, vec_slab)."""
    d_in, d_main = fw.shape
    d_hidden = blocks[0][2].shape[1]
    d_out = hw.shape[1]
    d_max = max(d_main, d_hidden, d_out)

    def row(v):
        v = jnp.asarray(v, jnp.float32).reshape(-1)
        return jnp.pad(v, (0, d_max - v.shape[0]))

    rows = []
    w1s, w2s = [], []
    for gamma, beta, w1, b1, w2, _b2 in blocks:
        rows += [row(gamma), row(beta), row(b1)]
        w1s.append(w1)
        w2s.append(w2)
    rows += [row(head_gamma), row(head_beta), row(hb)]

    vec_slab = jnp.stack(rows)                          # (3*n_blocks + 3, d_max) f32
    fw_c = jnp.asarray(fw, compute_dtype)               # (d_in, d_main)
    hw_c = jnp.asarray(hw, compute_dtype)               # (d_main, d_out)
    w1_stack = jnp.stack(w1s).astype(compute_dtype)     # (n_blocks, d_main, d_hidden)
    w2_stack = jnp.stack(w2s).astype(compute_dtype)     # (n_blocks, d_hidden, d_main)
    return fw_c, w1_stack, w2_stack, hw_c, vec_slab


def _round_up(v, m):
    return (v + m - 1) // m * m


def _vmem_limit_bytes(batch, d_in, d_main, d_hidden, d_out, n_blocks):
    """Rough padded-VMEM footprint with headroom, clamped to a value that is
    safe across v5e / v6e (128 MiB physical) and v7x (64 MiB physical)."""
    def pad(r, c, itemsize):
        sub = 8 * (4 // itemsize)          # 8 sublanes f32, 16 for bf16 packing
        return _round_up(max(r, 1), sub) * _round_up(max(c, 1), 128) * itemsize

    weights = (pad(d_in, d_main, 2)
               + n_blocks * (pad(d_main, d_hidden, 2) + pad(d_hidden, d_main, 2))
               + pad(d_main, d_out, 2))
    slab = pad(3 * n_blocks + 3, max(d_main, d_hidden, d_out), 4)
    io = pad(batch, d_in, 4) + pad(batch, d_out, 4)
    acts = 3 * pad(batch, d_main, 4) + 2 * pad(batch, d_hidden, 4)
    est = weights + slab + io + acts
    return int(min(48 * 2**20, max(16 * 2**20, 4 * est)))


def rtdl_resnet_forward(x, packed, *, n_blocks, d_main, d_hidden, d_out,
                        compute_dtype=jnp.bfloat16):
    fw, w1, w2, hw, vecs = packed
    batch, d_in = x.shape
    kernel = make_resnet_kernel(n_blocks, d_main, d_hidden, d_out, compute_dtype)
    out_shape = jax.ShapeDtypeStruct((batch, d_out), jnp.float32)
    fn = pl.pallas_call(
        kernel,
        out_shape=out_shape,
        # Gridless: whole (small) batch resident in VMEM so BatchNorm batch
        # statistics cover the full batch, matching PyTorch train-mode BN.
        # TODO(synk): large-batch version = two-phase batch grid (global BN
        # stats pass, then a "parallel" normalize+matmul pass) with weights on
        # constant index_maps.
        in_specs=[pl.BlockSpec(memory_space=pltpu.MemorySpace.VMEM)] * 6,
        out_specs=pl.BlockSpec(memory_space=pltpu.MemorySpace.VMEM),
        compiler_params=pltpu.CompilerParams(
            vmem_limit_bytes=_vmem_limit_bytes(
                batch, d_in, d_main, d_hidden, d_out, n_blocks)),
    )
    # x stays f32 here; it is cast to the compute dtype inside the kernel to
    # avoid a separate un-fused wrapper cast pass over x in HBM.
    return fn(x, fw, w1, w2, hw, vecs)


# ------------------------- reference & init (host-side) -------------------------

def resnet_reference(x, fw, fb, blocks, head_gamma, head_beta, hw, hb):
    """Pure-JAX f32 reference matching the PyTorch module's forward()
    (including the bias terms the kernel provably elides)."""
    def bn(h, g, b):
        mean = jnp.mean(h, axis=0, keepdims=True)
        var = jnp.mean((h - mean) ** 2, axis=0, keepdims=True)
        return (h - mean) * jax.lax.rsqrt(var + BN_EPS) * g + b

    h = x @ fw + fb
    for gamma, beta, w1, b1, w2, b2 in blocks:
        z = bn(h, gamma, beta)
        z = jnp.maximum(z @ w1 + b1, 0.0)
        z = z @ w2 + b2
        h = h + z
    z = jnp.maximum(bn(h, head_gamma, head_beta), 0.0)
    return z @ hw + hb


def init_linear(key, fan_in, fan_out):
    # PyTorch-style 1/sqrt(fan_in) uniform bounds, weights stored (in, out).
    k_w, k_b = jax.random.split(key)
    bound = 1.0 / math.sqrt(fan_in)
    w = jax.random.uniform(k_w, (fan_in, fan_out), jnp.float32, -bound, bound)
    b = jax.random.uniform(k_b, (fan_out,), jnp.float32, -bound, bound)
    return w, b


if __name__ == "__main__":
    # config: input_size=16, main_dim=32, hidden_dim=64, output_size=4, n_blocks=2
    batch, d_in, d_main, d_hidden, d_out, n_blocks = 8, 16, 32, 64, 4, 2

    key = jax.random.PRNGKey(0)
    key, kx = jax.random.split(key)
    x = jax.random.normal(kx, (batch, d_in), jnp.float32)

    key, kf = jax.random.split(key)
    fw, fb = init_linear(kf, d_in, d_main)

    blocks = []
    for _ in range(n_blocks):
        key, k1 = jax.random.split(key)
        w1, b1 = init_linear(k1, d_main, d_hidden)
        key, k2 = jax.random.split(key)
        w2, b2 = init_linear(k2, d_hidden, d_main)
        blocks.append((jnp.ones((d_main,), jnp.float32),
                       jnp.zeros((d_main,), jnp.float32),
                       w1, b1, w2, b2))

    head_gamma = jnp.ones((d_main,), jnp.float32)
    head_beta = jnp.zeros((d_main,), jnp.float32)
    key, kh = jax.random.split(key)
    hw, hb = init_linear(kh, d_main, d_out)

    packed = pack_params(fw, fb, blocks, head_gamma, head_beta, hw, hb)

    fwd = jax.jit(functools.partial(rtdl_resnet_forward,
                                    n_blocks=n_blocks, d_main=d_main,
                                    d_hidden=d_hidden, d_out=d_out))
    out = fwd(x, packed)
    jax.block_until_ready(out)
    assert out.shape == (batch, d_out), out.shape

    # Correctness vs f32 reference (tolerance sized for bf16 matmul inputs).
    ref = resnet_reference(x, fw, fb, blocks, head_gamma, head_beta, hw, hb)
    assert jnp.allclose(out, ref, atol=5e-2, rtol=5e-2), \
        float(jnp.max(jnp.abs(out - ref)))

    print("KERNEL_OK")
</pallas_src>

<mosaic_0001>
module attributes {stable_mosaic.version = 11 : i64} {
  func.func @kernel(%arg0: memref<8x16xf32, #tpu.memory_space<vmem>>, %arg1: memref<16x32xbf16, #tpu.memory_space<vmem>>, %arg2: memref<2x32x64xbf16, #tpu.memory_space<vmem>>, %arg3: memref<2x64x32xbf16, #tpu.memory_space<vmem>>, %arg4: memref<32x4xbf16, #tpu.memory_space<vmem>>, %arg5: memref<9x64xf32, #tpu.memory_space<vmem>>, %arg6: memref<8x4xf32, #tpu.memory_space<vmem>>) attributes {dimension_semantics = [], scalar_prefetch = 0 : i64, scratch_operands = 0 : i64, tpu.core_type = #tpu.core_type<tc>} {
    %c0 = arith.constant 0 : index
    %c0_0 = arith.constant 0 : index
    %0 = vector.load %arg0[%c0, %c0_0] : memref<8x16xf32, #tpu.memory_space<vmem>>, vector<8x16xf32>
    %1 = arith.truncf %0 : vector<8x16xf32> to vector<8x16xbf16>
    %c0_1 = arith.constant 0 : index
    %c0_2 = arith.constant 0 : index
    %2 = vector.load %arg1[%c0_1, %c0_2] : memref<16x32xbf16, #tpu.memory_space<vmem>>, vector<16x32xbf16>
    %cst = arith.constant dense<0.000000e+00> : vector<8x32xf32>
    %3 = tpu.matmul %1, %2, %cst {dimension_numbers = #tpu.dot_dimension_numbers<[1], [0], [0], [1], [0, 0, 1, 1], [], []>} : vector<8x16xbf16>, vector<16x32xbf16>, vector<8x32xf32> -> vector<8x32xf32>
    %c0_3 = arith.constant 0 : index
    %c0_4 = arith.constant 0 : index
    %4 = vector.load %arg5[%c0_3, %c0_4] : memref<9x64xf32, #tpu.memory_space<vmem>>, vector<1x32xf32>
    %c1 = arith.constant 1 : index
    %c0_5 = arith.constant 0 : index
    %5 = vector.load %arg5[%c1, %c0_5] : memref<9x64xf32, #tpu.memory_space<vmem>>, vector<1x32xf32>
    %c2 = arith.constant 2 : index
    %c0_6 = arith.constant 0 : index
    %6 = vector.load %arg5[%c2, %c0_6] : memref<9x64xf32, #tpu.memory_space<vmem>>, vector<1x64xf32>
    %cst_7 = arith.constant dense<0.000000e+00> : vector<32xf32>
    %7 = vector.multi_reduction <add>, %3, %cst_7 [0] : vector<8x32xf32> to vector<32xf32>
    %8 = vector.shape_cast %7 : vector<32xf32> to vector<1x32xf32>
    %9 = arith.mulf %3, %3 : vector<8x32xf32>
    %cst_8 = arith.constant dense<0.000000e+00> : vector<32xf32>
    %10 = vector.multi_reduction <add>, %9, %cst_8 [0] : vector<8x32xf32> to vector<32xf32>
    %11 = vector.shape_cast %10 : vector<32xf32> to vector<1x32xf32>
    %cst_9 = arith.constant 1.250000e-01 : f32
    %12 = vector.broadcast %cst_9 : f32 to vector<1x32xf32>
    %13 = arith.mulf %8, %12 : vector<1x32xf32>
    %cst_10 = arith.constant 1.250000e-01 : f32
    %14 = vector.broadcast %cst_10 : f32 to vector<1x32xf32>
    %15 = arith.mulf %11, %14 : vector<1x32xf32>
    %16 = arith.mulf %13, %13 : vector<1x32xf32>
    %17 = arith.subf %15, %16 : vector<1x32xf32>
    %cst_11 = arith.constant 0.000000e+00 : f32
    %18 = vector.broadcast %cst_11 : f32 to vector<1x32xf32>
    %19 = arith.maximumf %17, %18 : vector<1x32xf32>
    %cst_12 = arith.constant 9.99999974E-6 : f32
    %20 = vector.broadcast %cst_12 : f32 to vector<1x32xf32>
    %21 = arith.addf %19, %20 : vector<1x32xf32>
    %22 = math.rsqrt %21 : vector<1x32xf32>
    %23 = arith.mulf %4, %22 : vector<1x32xf32>
    %24 = arith.mulf %13, %23 : vector<1x32xf32>
    %25 = arith.subf %5, %24 : vector<1x32xf32>
    %26 = vector.broadcast %23 : vector<1x32xf32> to vector<8x32xf32>
    %27 = arith.mulf %3, %26 : vector<8x32xf32>
    %28 = vector.broadcast %25 : vector<1x32xf32> to vector<8x32xf32>
    %29 = arith.addf %27, %28 : vector<8x32xf32>
    %30 = arith.truncf %29 : vector<8x32xf32> to vector<8x32xbf16>
    %c0_13 = arith.constant 0 : index
    %c0_14 = arith.constant 0 : index
    %c0_15 = arith.constant 0 : index
    %31 = vector.load %arg2[%c0_13, %c0_14, %c0_15] : memref<2x32x64xbf16, #tpu.memory_space<vmem>>, vector<1x32x64xbf16>
    %32 = vector.shape_cast %31 : vector<1x32x64xbf16> to vector<32x64xbf16>
    %cst_16 = arith.constant dense<0.000000e+00> : vector<8x64xf32>
    %33 = tpu.matmul %30, %32, %cst_16 {dimension_numbers = #tpu.dot_dimension_numbers<[1], [0], [0], [1], [0, 0, 1, 1], [], []>} : vector<8x32xbf16>, vector<32x64xbf16>, vector<8x64xf32> -> vector<8x64xf32>
    %34 = vector.broadcast %6 : vector<1x64xf32> to vector<8x64xf32>
    %35 = arith.addf %33, %34 : vector<8x64xf32>
    %cst_17 = arith.constant 0.000000e+00 : f32
    %36 = vector.broadcast %cst_17 : f32 to vector<8x64xf32>
    %37 = arith.maximumf %35, %36 : vector<8x64xf32>
    %38 = arith.truncf %37 : vector<8x64xf32> to vector<8x64xbf16>
    %c0_18 = arith.constant 0 : index
    %c0_19 = arith.constant 0 : index
    %c0_20 = arith.constant 0 : index
    %39 = vector.load %arg3[%c0_18, %c0_19, %c0_20] : memref<2x64x32xbf16, #tpu.memory_space<vmem>>, vector<1x64x32xbf16>
    %40 = vector.shape_cast %39 : vector<1x64x32xbf16> to vector<64x32xbf16>
    %cst_21 = arith.constant dense<0.000000e+00> : vector<8x32xf32>
    %41 = tpu.matmul %38, %40, %cst_21 {dimension_numbers = #tpu.dot_dimension_numbers<[1], [0], [0], [1], [0, 0, 1, 1], [], []>} : vector<8x64xbf16>, vector<64x32xbf16>, vector<8x32xf32> -> vector<8x32xf32>
    %42 = arith.addf %3, %41 : vector<8x32xf32>
    %c3 = arith.constant 3 : index
    %c0_22 = arith.constant 0 : index
    %43 = vector.load %arg5[%c3, %c0_22] : memref<9x64xf32, #tpu.memory_space<vmem>>, vector<1x32xf32>
    %c4 = arith.constant 4 : index
    %c0_23 = arith.constant 0 : index
    %44 = vector.load %arg5[%c4, %c0_23] : memref<9x64xf32, #tpu.memory_space<vmem>>, vector<1x32xf32>
    %c5 = arith.constant 5 : index
    %c0_24 = arith.constant 0 : index
    %45 = vector.load %arg5[%c5, %c0_24] : memref<9x64xf32, #tpu.memory_space<vmem>>, vector<1x64xf32>
    %cst_25 = arith.constant dense<0.000000e+00> : vector<32xf32>
    %46 = vector.multi_reduction <add>, %42, %cst_25 [0] : vector<8x32xf32> to vector<32xf32>
    %47 = vector.shape_cast %46 : vector<32xf32> to vector<1x32xf32>
    %48 = arith.mulf %42, %42 : vector<8x32xf32>
    %cst_26 = arith.constant dense<0.000000e+00> : vector<32xf32>
    %49 = vector.multi_reduction <add>, %48, %cst_26 [0] : vector<8x32xf32> to vector<32xf32>
    %50 = vector.shape_cast %49 : vector<32xf32> to vector<1x32xf32>
    %cst_27 = arith.constant 1.250000e-01 : f32
    %51 = vector.broadcast %cst_27 : f32 to vector<1x32xf32>
    %52 = arith.mulf %47, %51 : vector<1x32xf32>
    %cst_28 = arith.constant 1.250000e-01 : f32
    %53 = vector.broadcast %cst_28 : f32 to vector<1x32xf32>
    %54 = arith.mulf %50, %53 : vector<1x32xf32>
    %55 = arith.mulf %52, %52 : vector<1x32xf32>
    %56 = arith.subf %54, %55 : vector<1x32xf32>
    %cst_29 = arith.constant 0.000000e+00 : f32
    %57 = vector.broadcast %cst_29 : f32 to vector<1x32xf32>
    %58 = arith.maximumf %56, %57 : vector<1x32xf32>
    %cst_30 = arith.constant 9.99999974E-6 : f32
    %59 = vector.broadcast %cst_30 : f32 to vector<1x32xf32>
    %60 = arith.addf %58, %59 : vector<1x32xf32>
    %61 = math.rsqrt %60 : vector<1x32xf32>
    %62 = arith.mulf %43, %61 : vector<1x32xf32>
    %63 = arith.mulf %52, %62 : vector<1x32xf32>
    %64 = arith.subf %44, %63 : vector<1x32xf32>
    %65 = vector.broadcast %62 : vector<1x32xf32> to vector<8x32xf32>
    %66 = arith.mulf %42, %65 : vector<8x32xf32>
    %67 = vector.broadcast %64 : vector<1x32xf32> to vector<8x32xf32>
    %68 = arith.addf %66, %67 : vector<8x32xf32>
    %69 = arith.truncf %68 : vector<8x32xf32> to vector<8x32xbf16>
    %c1_31 = arith.constant 1 : index
    %c0_32 = arith.constant 0 : index
    %c0_33 = arith.constant 0 : index
    %70 = vector.load %arg2[%c1_31, %c0_32, %c0_33] : memref<2x32x64xbf16, #tpu.memory_space<vmem>>, vector<1x32x64xbf16>
    %71 = vector.shape_cast %70 : vector<1x32x64xbf16> to vector<32x64xbf16>
    %cst_34 = arith.constant dense<0.000000e+00> : vector<8x64xf32>
    %72 = tpu.matmul %69, %71, %cst_34 {dimension_numbers = #tpu.dot_dimension_numbers<[1], [0], [0], [1], [0, 0, 1, 1], [], []>} : vector<8x32xbf16>, vector<32x64xbf16>, vector<8x64xf32> -> vector<8x64xf32>
    %73 = vector.broadcast %45 : vector<1x64xf32> to vector<8x64xf32>
    %74 = arith.addf %72, %73 : vector<8x64xf32>
    %cst_35 = arith.constant 0.000000e+00 : f32
    %75 = vector.broadcast %cst_35 : f32 to vector<8x64xf32>
    %76 = arith.maximumf %74, %75 : vector<8x64xf32>
    %77 = arith.truncf %76 : vector<8x64xf32> to vector<8x64xbf16>
    %c1_36 = arith.constant 1 : index
    %c0_37 = arith.constant 0 : index
    %c0_38 = arith.constant 0 : index
    %78 = vector.load %arg3[%c1_36, %c0_37, %c0_38] : memref<2x64x32xbf16, #tpu.memory_space<vmem>>, vector<1x64x32xbf16>
    %79 = vector.shape_cast %78 : vector<1x64x32xbf16> to vector<64x32xbf16>
    %cst_39 = arith.constant dense<0.000000e+00> : vector<8x32xf32>
    %80 = tpu.matmul %77, %79, %cst_39 {dimension_numbers = #tpu.dot_dimension_numbers<[1], [0], [0], [1], [0, 0, 1, 1], [], []>} : vector<8x64xbf16>, vector<64x32xbf16>, vector<8x32xf32> -> vector<8x32xf32>
    %81 = arith.addf %42, %80 : vector<8x32xf32>
    %c6 = arith.constant 6 : index
    %c0_40 = arith.constant 0 : index
    %82 = vector.load %arg5[%c6, %c0_40] : memref<9x64xf32, #tpu.memory_space<vmem>>, vector<1x32xf32>
    %c7 = arith.constant 7 : index
    %c0_41 = arith.constant 0 : index
    %83 = vector.load %arg5[%c7, %c0_41] : memref<9x64xf32, #tpu.memory_space<vmem>>, vector<1x32xf32>
    %c8 = arith.constant 8 : index
    %c0_42 = arith.constant 0 : index
    %84 = vector.load %arg5[%c8, %c0_42] : memref<9x64xf32, #tpu.memory_space<vmem>>, vector<1x4xf32>
    %cst_43 = arith.constant dense<0.000000e+00> : vector<32xf32>
    %85 = vector.multi_reduction <add>, %81, %cst_43 [0] : vector<8x32xf32> to vector<32xf32>
    %86 = vector.shape_cast %85 : vector<32xf32> to vector<1x32xf32>
    %87 = arith.mulf %81, %81 : vector<8x32xf32>
    %cst_44 = arith.constant dense<0.000000e+00> : vector<32xf32>
    %88 = vector.multi_reduction <add>, %87, %cst_44 [0] : vector<8x32xf32> to vector<32xf32>
    %89 = vector.shape_cast %88 : vector<32xf32> to vector<1x32xf32>
    %cst_45 = arith.constant 1.250000e-01 : f32
    %90 = vector.broadcast %cst_45 : f32 to vector<1x32xf32>
    %91 = arith.mulf %86, %90 : vector<1x32xf32>
    %cst_46 = arith.constant 1.250000e-01 : f32
    %92 = vector.broadcast %cst_46 : f32 to vector<1x32xf32>
    %93 = arith.mulf %89, %92 : vector<1x32xf32>
    %94 = arith.mulf %91, %91 : vector<1x32xf32>
    %95 = arith.subf %93, %94 : vector<1x32xf32>
    %cst_47 = arith.constant 0.000000e+00 : f32
    %96 = vector.broadcast %cst_47 : f32 to vector<1x32xf32>
    %97 = arith.maximumf %95, %96 : vector<1x32xf32>
    %cst_48 = arith.constant 9.99999974E-6 : f32
    %98 = vector.broadcast %cst_48 : f32 to vector<1x32xf32>
    %99 = arith.addf %97, %98 : vector<1x32xf32>
    %100 = math.rsqrt %99 : vector<1x32xf32>
    %101 = arith.mulf %82, %100 : vector<1x32xf32>
    %102 = arith.mulf %91, %101 : vector<1x32xf32>
    %103 = arith.subf %83, %102 : vector<1x32xf32>
    %104 = vector.broadcast %101 : vector<1x32xf32> to vector<8x32xf32>
    %105 = arith.mulf %81, %104 : vector<8x32xf32>
    %106 = vector.broadcast %103 : vector<1x32xf32> to vector<8x32xf32>
    %107 = arith.addf %105, %106 : vector<8x32xf32>
    %cst_49 = arith.constant 0.000000e+00 : f32
    %108 = vector.broadcast %cst_49 : f32 to vector<8x32xf32>
    %109 = arith.maximumf %107, %108 : vector<8x32xf32>
    %110 = arith.truncf %109 : vector<8x32xf32> to vector<8x32xbf16>
    %c0_50 = arith.constant 0 : index
    %c0_51 = arith.constant 0 : index
    %111 = vector.load %arg4[%c0_50, %c0_51] : memref<32x4xbf16, #tpu.memory_space<vmem>>, vector<32x4xbf16>
    %cst_52 = arith.constant dense<0.000000e+00> : vector<8x4xf32>
    %112 = tpu.matmul %110, %111, %cst_52 {dimension_numbers = #tpu.dot_dimension_numbers<[1], [0], [0], [1], [0, 0, 1, 1], [], []>} : vector<8x32xbf16>, vector<32x4xbf16>, vector<8x4xf32> -> vector<8x4xf32>
    %113 = vector.broadcast %84 : vector<1x4xf32> to vector<8x4xf32>
    %114 = arith.addf %112, %113 : vector<8x4xf32>
    %c0_53 = arith.constant 0 : index
    %c0_54 = arith.constant 0 : index
    %115 = vector.load %arg6[%c0_53, %c0_54] : memref<8x4xf32, #tpu.memory_space<vmem>>, vector<8x4xf32>
    tpu.vector_store %arg6[%c0_53, %c0_54], %114 {strides = array<i32>} : memref<8x4xf32, #tpu.memory_space<vmem>>, vector<8x4xf32>,
    return
  }
}

</mosaic_0001>

<bundles_post_ra>
// kernel: rtdl_resnet_forward.1
= control target key start
LH: loop header
LB: loop body
LE: loop exit
PB: predicated region body
PF: predicated region fallthrough
CT: control target
= control target key end

     0   :  { %v685_v0 = vmov 0.0   ;;  %vm686_vm0 = vmmov 0   ;;  %vm34_vm1 = vcmask 130048   ;;  %vm81_vm2 = vcmask 261120   ;;  %s860_s1 = inlined_call_operand.vmem [shape: bf16[16,32], index: 1, kind: input, shape index: {}]   ;;  %s861_s0 = inlined_call_operand.vmem [shape: f32[8,16], index: 0, kind: input, shape index: {}]   ;;  %s862_s2 = inlined_call_operand.vmem [shape: bf16[2,32,64], index: 2, kind: input, shape index: {}]   ;;  %s863_s3 = inlined_call_operand.vmem [shape: bf16[2,64,32], index: 3, kind: input, shape index: {}]   ;;  %s864_s5 = inlined_call_operand.vmem [shape: f32[9,64], index: 5, kind: input, shape index: {}]   ;;  %s865_s4 = inlined_call_operand.vmem [shape: bf16[32,4], index: 4, kind: input, shape index: {}]   ;;  %s866_s6 = inlined_call_operand.vmem [shape: f32[8,4], index: 6, kind: output, shape index: {}]  }
   0x1   :  { %608 = vmatprep.subr.bf16.mxu0 %v685_v0  ;;  %v664_v1 = vld [vmem:[%s860_s1] sm:$0xff]   ;;  %610 = vmatprep.mubr.msk.bf16.mxu0 %vm686_vm0, %v685_v0  ;;  %v665_v4 = vld [vmem:[%s862_s2 + $0x8] sm:$0xff]   ;;  %v667_v6 = vld [vmem:[%s863_s3 + $0x18] sm:$0xff]   ;;  %v107_v33 = vlaneseq  ;;  %vm215_vm3 = vcmask 523264   ;;  %vm545_vm4 = vcmask 31744  }
   0x2   :  { %v24_v2 = vld [vmem:[%s861_s0] sm:$0xff]  ;;  %614 = vmatprep.subr.bf16.mxu1 %v685_v0  ;;  %618 = vmatprep.mubr.msk.bf16.mxu1 %vm686_vm0, %v685_v0  ;;  %v668_v7 = vld [vmem:[%s863_s3 + $0x10] sm:$0xff]   ;;  %v669_v47 = vld [vmem:[%s863_s3 + $0x8] sm:$0xff]  }
   0x3   :  { %609 = vmatpush3.bf16.msra.mxu0 %v664_v1  ;;  %v25_v3 = vpack.c.bf16 %v24_v2, %v24_v2  ;;  %615 = vmatpush3.bf16.msra.mxu1 %v665_v4  ;;  %v666_v5 = vld [vmem:[%s862_s2] sm:$0xff]   ;;  %v108_v34 = vshrl.u32 %v107_v33, 7  ;;  %v671_v57 = vld [vmem:[%s862_s2 + $0x18] sm:$0xff]   ;;  %v672_v58 = vld [vmem:[%s862_s2 + $0x10] sm:$0xff]  }
   0x4   :  { %622 = vmatprep.subr.bf16.mxu0 %v685_v0  ;;  %616 = vmatprep.subr.bf16.mxu1 %v685_v0  ;;  %v78_v35 = vld [vmem:[%s864_s5] sm:$0x1]  ;;  %v79_v39 = vld [vmem:[%s864_s5 + $0x1] sm:$0x1]  ;;  %v553_v49 = vld [vmem:[%s864_s5 + $0x2] ss:$0 sm:$0xff] }
   0x5   :  { %v763_v36 = vsub.s32 0, %v108_v34  ;;  %v670_v48 = vld [vmem:[%s863_s3] sm:$0xff]   ;;  %v674_v34 = vld [vmem:[%s863_s3 + $0x30] sm:$0xff]  }
   0x6   :  { %611 = vmatmul.mubr.msk.bf16.vlgmr.msra.gmra.mxu0 %vm34_vm1, %v25_v3 }
   0x7   :  { %630 = vmatprep.mubr.msk.bf16.mxu0 %vm686_vm0, %v685_v0  ;;  %617 = vmatpush3.bf16.msra.mxu1 %v666_v5 }
   0x8   :  { %634 = vmatprep.subr.bf16.mxu1 %v685_v0  ;;  %623 = vmatpush3.bf16.msra.mxu0 %v667_v6 }
   0x9   :  { %624 = vmatprep.subr.bf16.mxu0 %v685_v0 }
   0xc   :  { %625 = vmatpush3.bf16.msra.mxu0 %v668_v7 }
   0xd   :  { %626 = vmatprep.subr.bf16.mxu0 %v685_v0 }
  0x10   :  { %627 = vmatpush3.bf16.msra.mxu0 %v669_v47  ;;  %v678_v47 = vld [vmem:[%s865_s4] sm:$0xff]  }
  0x11   :  { %628 = vmatprep.subr.bf16.mxu0 %v685_v0 }
  0x14   :  { %629 = vmatpush3.bf16.msra.mxu0 %v670_v48 }
  0x15   :  { %654 = vmatprep.subr.bf16.mxu0 %v685_v0 }
  0xc6   :  { %v753_v8 = vpop.f32.mrf.mxu0 }
  0xc7   :  { %v82_v9 = vsel %vm81_vm2, %v753_v8, 0.0  ;;  %v89_v10 = vmul.f32 %v753_v8, %v753_v8 }
  0xc8   :  { %v83_v11 = vrot.slane %v82_v9, 4  ;;  %v612_v12 = vpop.f32.mrf.mxu0 }
  0xc9   :  { %v90_v13 = vsel %vm81_vm2, %v89_v10, 0.0 }
  0xca   :  { %v84_v14 = vadd.f32 %v83_v11, %v82_v9  ;;  %v91_v15 = vrot.slane %v90_v13, 4  ;;  %v75_v16 = vpop.f32.mrf.mxu0 }
  0xcc   :  { %v85_v17 = vrot.slane %v84_v14, 2  ;;  %v92_v18 = vadd.f32 %v91_v15, %v90_v13  ;;  %v613_v19 = vpop.f32.mrf.mxu0 }
  0xce   :  { %v86_v20 = vadd.f32 %v85_v17, %v84_v14  ;;  %v93_v21 = vrot.slane %v92_v18, 2 }
  0xd0   :  { %v87_v22 = vrot.slane %v86_v20, 1  ;;  %v94_v23 = vadd.f32 %v93_v21, %v92_v18 }
  0xd2   :  { %v88_v24 = vadd.f32 %v87_v22, %v86_v20  ;;  %v95_v25 = vrot.slane %v94_v23, 1  ;;  %v260_v22 = vld [vmem:[%s864_s5 + $0x3] sm:$0x1] }
  0xd4   :  { %v96_v26 = vadd.f32 %v95_v25, %v94_v23  ;;  %v97_v27 = vmul.f32 0.125, %v88_v24  ;;  %v261_v25 = vld [vmem:[%s864_s5 + $0x4] sm:$0x1] }
  0xd6   :  { %v98_v28 = vmul.f32 0.125, %v96_v26  ;;  %v99_v29 = vmul.f32 %v97_v27, %v97_v27 }
  0xd8   :  { %v100_v30 = vsub.f32 %v98_v28, %v99_v29 }
  0xda   :  { %v101_v31 = vmax.f32 %v100_v30, 0.0 }
  0xdc   :  { %v102_v32 = vadd.f32 1e-05, %v101_v31 }
  0xde   :  { %679 = vrsqrt.f32 %v102_v32  ;;  %v673_v32 = vld [vmem:[%s863_s3 + $0x38] sm:$0xff]  }
  0xeb   :  { %v680_v37 = vpop.eup %679 }
  0xec   :  { %v104_v38 = vmul.f32 %v680_v37, %v78_v35  ;;  %v675_v35 = vld [vmem:[%s863_s3 + $0x28] sm:$0xff]   ;;  %v676_v37 = vld [vmem:[%s863_s3 + $0x20] sm:$0xff]  }
  0xee   :  { %v105_v40 = vmul.f32 %v104_v38, %v97_v27  ;;  %v110_v41 = vrot.slane %v104_v38, %v763_v36  ;;  %v566_v38 = vld [vmem:[%s864_s5 + $0x5] ss:$0 sm:$0xff] }
  0xf0   :  { %v106_v42 = vsub.f32 %v79_v39, %v105_v40  ;;  %v111_v43 = vmul.f32 %v110_v41, %v753_v8 }
  0xf2   :  { %v115_v44 = vrot.slane %v106_v42, %v763_v36 }
  0xf4   :  { %v116_v45 = vadd.f32 %v115_v44, %v111_v43 }
  0xf6   :  { %v117_v46 = vpack.c.bf16 %v116_v45, %v116_v45 }
  0xf8   :  { %619 = vmatmul.mubr.msk.bf16.vlgmr.msra.gmra.mxu1 %vm81_vm2, %v117_v46  ;;  %v677_v46 = vld [vmem:[%s865_s4 + $0x8] sm:$0xff]  }
  0xf9   :  { %638 = vmatprep.mubr.msk.bf16.mxu1 %vm686_vm0, %v685_v0  ;;  %635 = vmatpush3.bf16.msra.mxu1 %v671_v57 }
  0xfa   :  { %636 = vmatprep.subr.bf16.mxu1 %v685_v0 }
  0xfd   :  { %637 = vmatpush3.bf16.msra.mxu1 %v672_v58 }
  0xfe   :  { %642 = vmatprep.subr.bf16.mxu1 %v685_v0 }
 0x1b8   :  { %v175_v50 = vpop.f32.mrf.mxu1 }
 0x1b9   :  { %v176_v51 = vadd.f32 %v553_v49, %v175_v50 }
 0x1ba   :  { %v620_v52 = vpop.f32.mrf.mxu1 }
 0x1bb   :  { %v181_v53 = vmax.f32 %v176_v51, 0.0 }
 0x1bc   :  { %v178_v54 = vpop.f32.mrf.mxu1 }
 0x1bd   :  { %v182_v55 = vpack.c.bf16 %v181_v53, %v181_v53 }
 0x1be   :  { %v621_v56 = vpop.f32.mrf.mxu1 }
 0x1bf   :  { %631 = vmatmul.mubr.msk.bf16.vlgmr.msra.gmra.mxu0 %vm215_vm3, %v182_v55 }
 0x1c0   :  { %658 = vmatprep.mubr.msk.bf16.mxu0 %vm686_vm0, %v685_v0  ;;  %655 = vmatpush3.bf16.msra.mxu0 %v677_v46 }
 0x1c1   :  { %656 = vmatprep.subr.bf16.mxu0 %v685_v0 }
 0x1c4   :  { %657 = vmatpush3.bf16.msra.mxu0 %v678_v47 }
 0x27f   :  { %v253_v59 = vpop.f32.mrf.mxu0 }
 0x280   :  { %v797_v60 = vadd.f32 %v253_v59, %v753_v8 }
 0x281   :  { %v632_v61 = vpop.f32.mrf.mxu0 }
 0x282   :  { %v263_v62 = vsel %vm81_vm2, %v797_v60, 0.0  ;;  %v270_v63 = vmul.f32 %v797_v60, %v797_v60 }
 0x283   :  { %v264_v1 = vrot.slane %v263_v62, 4  ;;  %v256_v2 = vpop.f32.mrf.mxu0 }
 0x284   :  { %v271_v3 = vsel %vm81_vm2, %v270_v63, 0.0 }
 0x285   :  { %v265_v4 = vadd.f32 %v264_v1, %v263_v62  ;;  %v272_v5 = vrot.slane %v271_v3, 4  ;;  %v633_v6 = vpop.f32.mrf.mxu0 }
 0x287   :  { %v266_v7 = vrot.slane %v265_v4, 2  ;;  %v273_v9 = vadd.f32 %v272_v5, %v271_v3 }
 0x289   :  { %v267_v10 = vadd.f32 %v266_v7, %v265_v4  ;;  %v274_v11 = vrot.slane %v273_v9, 2 }
 0x28b   :  { %v268_v8 = vrot.slane %v267_v10, 1  ;;  %v275_v12 = vadd.f32 %v274_v11, %v273_v9  ;;  %v442_v11 = vld [vmem:[%s864_s5 + $0x6] sm:$0x1] }
 0x28d   :  { %v269_v13 = vadd.f32 %v268_v8, %v267_v10  ;;  %v276_v14 = vrot.slane %v275_v12, 1 }
 0x28f   :  { %v277_v15 = vadd.f32 %v276_v14, %v275_v12  ;;  %v278_v16 = vmul.f32 0.125, %v269_v13  ;;  %v443_v13 = vld [vmem:[%s864_s5 + $0x7] sm:$0x1] }
 0x291   :  { %v279_v17 = vmul.f32 0.125, %v277_v15  ;;  %v280_v18 = vmul.f32 %v278_v16, %v278_v16 }
 0x293   :  { %v281_v19 = vsub.f32 %v279_v17, %v280_v18 }
 0x295   :  { %v282_v20 = vmax.f32 %v281_v19, 0.0 }
 0x297   :  { %v283_v21 = vadd.f32 1e-05, %v282_v20 }
 0x299   :  { %681 = vrsqrt.f32 %v283_v21 }
 0x2a6   :  { %v682_v23 = vpop.eup %681 }
 0x2a7   :  { %v285_v24 = vmul.f32 %v682_v23, %v260_v22  ;;  %v583_v22 = vld [vmem:[%s864_s5 + $0x8] ss:$0 sm:$0xff] }
 0x2a9   :  { %v286_v26 = vmul.f32 %v285_v24, %v278_v16  ;;  %v291_v27 = vrot.slane %v285_v24, %v763_v36 }
 0x2ab   :  { %v287_v28 = vsub.f32 %v261_v25, %v286_v26  ;;  %v292_v29 = vmul.f32 %v291_v27, %v797_v60 }
 0x2ad   :  { %v296_v30 = vrot.slane %v287_v28, %v763_v36 }
 0x2af   :  { %v297_v31 = vadd.f32 %v296_v30, %v292_v29 }
 0x2b1   :  { %v298_v33 = vpack.c.bf16 %v297_v31, %v297_v31 }
 0x2b3   :  { %639 = vmatmul.mubr.msk.bf16.vlgmr.msra.gmra.mxu1 %vm81_vm2, %v298_v33 }
 0x2b4   :  { %643 = vmatpush3.bf16.msra.mxu1 %v673_v32  ;;  %650 = vmatprep.mubr.msk.bf16.mxu1 %vm686_vm0, %v685_v0 }
 0x2b5   :  { %644 = vmatprep.subr.bf16.mxu1 %v685_v0 }
 0x2b8   :  { %645 = vmatpush3.bf16.msra.mxu1 %v674_v34 }
 0x2b9   :  { %646 = vmatprep.subr.bf16.mxu1 %v685_v0 }
 0x2bc   :  { %647 = vmatpush3.bf16.msra.mxu1 %v675_v35 }
 0x2bd   :  { %648 = vmatprep.subr.bf16.mxu1 %v685_v0 }
 0x2c0   :  { %649 = vmatpush3.bf16.msra.mxu1 %v676_v37 }
 0x373   :  { %v357_v39 = vpop.f32.mrf.mxu1 }
 0x374   :  { %v358_v40 = vadd.f32 %v566_v38, %v357_v39 }
 0x375   :  { %v640_v41 = vpop.f32.mrf.mxu1 }
 0x376   :  { %v363_v42 = vmax.f32 %v358_v40, 0.0 }
 0x377   :  { %v360_v43 = vpop.f32.mrf.mxu1 }
 0x378   :  { %v364_v44 = vpack.c.bf16 %v363_v42, %v363_v42 }
 0x379   :  { %v641_v45 = vpop.f32.mrf.mxu1 }
 0x37a   :  { %651 = vmatmul.mubr.msk.bf16.vlgmr.msra.gmra.mxu1 %vm215_vm3, %v364_v44 }
 0x43a   :  { %v435_v48 = vpop.f32.mrf.mxu1 }
 0x43b   :  { %v441_v49 = vadd.f32 %v435_v48, %v797_v60 }
 0x43c   :  { %v652_v50 = vpop.f32.mrf.mxu1 }
 0x43d   :  { %v445_v51 = vsel %vm81_vm2, %v441_v49, 0.0  ;;  %v452_v52 = vmul.f32 %v441_v49, %v441_v49 }
 0x43e   :  { %v446_v53 = vrot.slane %v445_v51, 4  ;;  %v438_v54 = vpop.f32.mrf.mxu1 }
 0x43f   :  { %v453_v55 = vsel %vm81_vm2, %v452_v52, 0.0 }
 0x440   :  { %v447_v56 = vadd.f32 %v446_v53, %v445_v51  ;;  %v454_v57 = vrot.slane %v453_v55, 4  ;;  %v653_v58 = vpop.f32.mrf.mxu1 }
 0x442   :  { %v448_v0 = vrot.slane %v447_v56, 2  ;;  %v455_v59 = vadd.f32 %v454_v57, %v453_v55 }
 0x444   :  { %v449_v61 = vadd.f32 %v448_v0, %v447_v56  ;;  %v456_v62 = vrot.slane %v455_v59, 2 }
 0x446   :  { %v450_v63 = vrot.slane %v449_v61, 1  ;;  %v457_v1 = vadd.f32 %v456_v62, %v455_v59 }
 0x448   :  { %v451_v2 = vadd.f32 %v450_v63, %v449_v61  ;;  %v458_v3 = vrot.slane %v457_v1, 1 }
 0x44a   :  { %v459_v60 = vadd.f32 %v458_v3, %v457_v1  ;;  %v460_v4 = vmul.f32 0.125, %v451_v2 }
 0x44c   :  { %v461_v5 = vmul.f32 0.125, %v459_v60  ;;  %v462_v6 = vmul.f32 %v460_v4, %v460_v4 }
 0x44e   :  { %v463_v7 = vsub.f32 %v461_v5, %v462_v6 }
 0x450   :  { %v464_v9 = vmax.f32 %v463_v7, 0.0 }
 0x452   :  { %v465_v10 = vadd.f32 1e-05, %v464_v9 }
 0x454   :  { %683 = vrsqrt.f32 %v465_v10 }
 0x461   :  { %v684_v8 = vpop.eup %683 }
 0x462   :  { %v467_v12 = vmul.f32 %v684_v8, %v442_v11 }
 0x464   :  { %v468_v14 = vmul.f32 %v467_v12, %v460_v4  ;;  %v473_v15 = vrot.slane %v467_v12, %v763_v36 }
 0x466   :  { %v469_v16 = vsub.f32 %v443_v13, %v468_v14  ;;  %v474_v17 = vmul.f32 %v473_v15, %v441_v49 }
 0x468   :  { %v478_v18 = vrot.slane %v469_v16, %v763_v36 }
 0x46a   :  { %v479_v19 = vadd.f32 %v478_v18, %v474_v17 }
 0x46c   :  { %v480_v20 = vmax.f32 %v479_v19, 0.0 }
 0x46e   :  { %v481_v21 = vpack.c.bf16 %v480_v20, %v480_v20 }
 0x470   :  { %659 = vmatmul.mubr.msk.bf16.vlgmr.msra.gmra.mxu0 %vm81_vm2, %v481_v21 }
 0x530   :  { %v539_v23 = vpop.f32.mrf.mxu0 }
 0x531   :  { %v540_v24 = vadd.f32 %v583_v22, %v539_v23 }
 0x532   :  { %v660_v25 = vpop.f32.mrf.mxu0 }
 0x533   :  { %546 = vst.msk [vmem:[%s866_s6] sm:$0xff] %vm545_vm4, %v540_v24 }
 0x534   :  { %v542_v26 = vpop.f32.mrf.mxu0 }
 0x536   :  { %v661_v27 = vpop.f32.mrf.mxu0 }

</bundles_post_ra>
